<compile_context>
chip_gen: v7x
topology: tpu7x:2x2x1
jax: 0.10.0
libtpu: 0.0.40
codegen_flags: <defaults>
</compile_context>

<pallas_src>
import functools
import math

import jax
import jax.numpy as jnp
from jax.experimental import pallas as pl
from jax.experimental.pallas import tpu as pltpu


# ----------------------------------------------------------------------------
# Helpers
# ----------------------------------------------------------------------------
def _round_up(x: int, m: int) -> int:
    return ((x + m - 1) // m) * m


def _pick_tk(k_pad: int, tk_max: int) -> int:
    """Largest multiple-of-128 divisor of k_pad that is <= tk_max."""
    if k_pad <= tk_max:
        return k_pad
    tk = (tk_max // 128) * 128
    while tk > 128 and k_pad % tk != 0:
        tk -= 128
    return tk


def _vmem_cap_bytes() -> int:
    """Per-generation VMEM cap: ~75% of physical, never above 96 MiB."""
    phys = 64 * 1024 * 1024                      # conservative fallback (v7x)
    try:
        info = pltpu.get_tpu_info()
        phys = int(getattr(info, "vmem_capacity_bytes", phys))
    except Exception:
        pass
    return int(min(phys * 3 // 4, 96 * 1024 * 1024))


def _vmem_budget_bytes(B, K, tk, tn, x_dtype, w_dtype, out_dtype) -> int:
    xb = jnp.dtype(x_dtype).itemsize
    wb = jnp.dtype(w_dtype).itemsize
    ob = jnp.dtype(out_dtype).itemsize
    est = 2 * B * K * xb              # resident activation (counted double-buffered)
    est += 2 * tk * tn * wb           # double-buffered weight tile
    est += 2 * tn * 4                 # double-buffered bias tile
    est += 2 * B * tn * ob            # double-buffered output tile
    est += B * tn * 4                 # f32 accumulator scratch
    est += 2 * 1024 * 1024            # compiler headroom
    return int(min(max(est, 16 * 1024 * 1024), _vmem_cap_bytes()))


# ----------------------------------------------------------------------------
# Kernels
# ----------------------------------------------------------------------------
def _linear_kernel_ktiled(x_ref, w_ref, b_ref, o_ref, acc_ref, *, tk,
                          apply_leaky: bool, negative_slope: float):
    """Grid = (N_tiles, K_tiles); x fully resident, weights streamed per tile."""
    k = pl.program_id(1)

    @pl.when(k == 0)
    def _init():
        acc_ref[...] = jnp.zeros_like(acc_ref)

    x_chunk = x_ref[:, pl.ds(pl.multiple_of(k * tk, 128), tk)]
    acc_ref[...] += jnp.dot(x_chunk, w_ref[...],
                            preferred_element_type=jnp.float32)

    @pl.when(k == pl.num_programs(1) - 1)
    def _finalize():
        acc = acc_ref[...] + b_ref[...]          # bias broadcast over batch rows
        if apply_leaky:
            acc = jnp.where(acc >= 0, acc, negative_slope * acc)
        o_ref[...] = acc.astype(o_ref.dtype)


def _linear_kernel_single(x_ref, w_ref, b_ref, o_ref, *, apply_leaky: bool,
                          negative_slope: float):
    """Single K tile: no accumulator scratch, no pl.when branching."""
    acc = jnp.dot(x_ref[...], w_ref[...], preferred_element_type=jnp.float32)
    acc = acc + b_ref[...]
    if apply_leaky:
        acc = jnp.where(acc >= 0, acc, negative_slope * acc)
    o_ref[...] = acc.astype(o_ref.dtype)


def pallas_linear(x, w, b, *, apply_leaky=False, negative_slope=0.1,
                  out_dtype=jnp.float32, tn=512, tk_max=6272):
    """y = x @ w + b (optionally LeakyReLU).

    Expects pre-padded operands:
      x: (B, K)   with B % 8 == 0, K % 128 == 0        (bf16 recommended)
      w: (K, N)   with N % min(tn, N) == 0              (bf16 recommended)
      b: (1, N)   float32
    """
    B, K = x.shape
    K2, N = w.shape
    assert K == K2, (K, K2)
    tn = min(tn, N)
    assert B % 8 == 0 and K % 128 == 0, (B, K)
    assert tn % 128 == 0 and N % tn == 0, (N, tn)

    tk = _pick_tk(K, tk_max)
    n_tiles = N // tn
    k_tiles = K // tk
    vmem_bytes = _vmem_budget_bytes(B, K, tk, tn, x.dtype, w.dtype, out_dtype)

    if k_tiles == 1:
        kernel = functools.partial(_linear_kernel_single,
                                   apply_leaky=apply_leaky,
                                   negative_slope=negative_slope)
        return pl.pallas_call(
            kernel,
            out_shape=jax.ShapeDtypeStruct((B, N), out_dtype),
            grid_spec=pltpu.PrefetchScalarGridSpec(
                num_scalar_prefetch=0,
                grid=(n_tiles,),
                in_specs=[
                    pl.BlockSpec((B, K), lambda j: (0, 0)),    # resident activation
                    pl.BlockSpec((K, tn), lambda j: (0, j)),   # weight N-tile
                    pl.BlockSpec((1, tn), lambda j: (0, j)),   # bias N-tile
                ],
                out_specs=pl.BlockSpec((B, tn), lambda j: (0, j)),
            ),
            compiler_params=pltpu.CompilerParams(
                dimension_semantics=("parallel",),
                vmem_limit_bytes=vmem_bytes),
        )(x, w, b)

    kernel = functools.partial(_linear_kernel_ktiled, tk=tk,
                               apply_leaky=apply_leaky,
                               negative_slope=negative_slope)
    return pl.pallas_call(
        kernel,
        out_shape=jax.ShapeDtypeStruct((B, N), out_dtype),
        grid_spec=pltpu.PrefetchScalarGridSpec(
            num_scalar_prefetch=0,
            grid=(n_tiles, k_tiles),
            in_specs=[
                pl.BlockSpec((B, K), lambda j, k: (0, 0)),     # resident activation
                pl.BlockSpec((tk, tn), lambda j, k: (k, j)),   # streamed weight tile
                pl.BlockSpec((1, tn), lambda j, k: (0, j)),    # bias N-tile
            ],
            out_specs=pl.BlockSpec((B, tn), lambda j, k: (0, j)),
            scratch_shapes=[pltpu.VMEM((B, tn), jnp.float32)],
        ),
        compiler_params=pltpu.CompilerParams(
            dimension_semantics=("parallel", "arbitrary"),
            vmem_limit_bytes=vmem_bytes),
    )(x, w, b)


# ----------------------------------------------------------------------------
# Parameter creation: xavier-uniform weights (stored transposed (in, out)),
# zero biases, zero-padded to tile multiples ONCE here, stored as bf16.
# NOTE: correctness of feeding the padded hidden activation straight into
# layer 2 requires the padded b1 columns (and padded w1 cols / w2 rows) to be
# exactly zero -- guaranteed here because we build them that way.
# ----------------------------------------------------------------------------
def xavier_uniform(key, fan_in, fan_out, dtype=jnp.float32):
    limit = math.sqrt(6.0 / (fan_in + fan_out))
    return jax.random.uniform(key, (fan_in, fan_out), dtype,
                              minval=-limit, maxval=limit)


def make_yolo_head_params(key, in_feat, hidden, out_dim, *, tn1=512):
    n2 = 7 * 7 * out_dim
    k1_pad = _round_up(in_feat, 128)
    h_pad = _round_up(hidden, tn1)
    n2_pad = _round_up(n2, 128)

    k1, k2 = jax.random.split(key)
    w1 = xavier_uniform(k1, in_feat, hidden)
    w2 = xavier_uniform(k2, hidden, n2)

    w1p = jnp.zeros((k1_pad, h_pad), jnp.bfloat16)
    w1p = w1p.at[:in_feat, :hidden].set(w1.astype(jnp.bfloat16))
    w2p = jnp.zeros((h_pad, n2_pad), jnp.bfloat16)
    w2p = w2p.at[:hidden, :n2].set(w2.astype(jnp.bfloat16))
    b1 = jnp.zeros((1, h_pad), jnp.float32)
    b2 = jnp.zeros((1, n2_pad), jnp.float32)
    return {"w1": w1p, "b1": b1, "w2": w2p, "b2": b2}


# ----------------------------------------------------------------------------
# Forward pass
# ----------------------------------------------------------------------------
def yolov1_head_forward(params, x, out_dim):
    """x: (B, C, 7, 7) NCHW feature map -> (B, 7, 7, out_dim)."""
    B = x.shape[0]
    x_flat = x.reshape(B, -1)                      # channels-first, as nn.Flatten
    k1_pad = params["w1"].shape[0]
    b_pad = _round_up(max(B, 8), 8)                # sublane-dense batch

    xp = jnp.pad(x_flat.astype(jnp.bfloat16),
                 ((0, b_pad - B), (0, k1_pad - x_flat.shape[1])))

    # Layer 1: Linear + (Dropout=identity in eval) + LeakyReLU(0.1), bf16 out.
    h = pallas_linear(xp, params["w1"], params["b1"],
                      apply_leaky=True, negative_slope=0.1,
                      out_dtype=jnp.bfloat16, tn=512, tk_max=6272)
    # Layer 2: one grid step (W2 fits a single VMEM block on all generations).
    y = pallas_linear(h, params["w2"], params["b2"],
                      apply_leaky=False, out_dtype=jnp.float32,
                      tn=params["w2"].shape[1], tk_max=6272)

    n2 = 7 * 7 * out_dim
    return y[:B, :n2].reshape(B, 7, 7, out_dim)


def yolov1_head_forward_ref(params, x, out_dim):
    """Pure-jnp reference using the same bf16 parameters / casts."""
    B = x.shape[0]
    x_flat = x.reshape(B, -1).astype(jnp.bfloat16).astype(jnp.float32)
    in_feat = x_flat.shape[1]
    w1 = params["w1"].astype(jnp.float32)[:in_feat]
    h = x_flat @ w1 + params["b1"].astype(jnp.float32)
    h = jnp.where(h >= 0, h, 0.1 * h)
    h = h.astype(jnp.bfloat16).astype(jnp.float32)
    w2 = params["w2"].astype(jnp.float32)
    y = h @ w2 + params["b2"].astype(jnp.float32)
    n2 = 7 * 7 * out_dim
    return y[:, :n2].reshape(B, 7, 7, out_dim)


if __name__ == "__main__":
    # Small, module-consistent shapes: B=2, C=16 (stand-in for 1024), 7x7 grid,
    # hidden=256 (stand-in for 4096), num_classes=20, box_per_grid=2.
    num_classes, box_per_grid = 20, 2
    out_dim = box_per_grid * 5 + num_classes          # 30
    B, C, H, W = 2, 16, 7, 7
    hidden = 256
    in_feat = C * H * W                               # 784

    key = jax.random.PRNGKey(0)
    kx, kp = jax.random.split(key)
    x = jax.random.normal(kx, (B, C, H, W), jnp.float32)
    params = make_yolo_head_params(kp, in_feat, hidden, out_dim)

    out = yolov1_head_forward(params, x, out_dim)
    out = jax.block_until_ready(out)

    ref = yolov1_head_forward_ref(params, x, out_dim)
    assert out.shape == (B, 7, 7, out_dim), out.shape
    assert jnp.allclose(out, ref, atol=1e-2, rtol=1e-2), "mismatch vs reference"

    print("KERNEL_OK")
</pallas_src>

<mosaic_0001>
module attributes {stable_mosaic.version = 11 : i64} {
  func.func @_linear_kernel_single(%arg0: i32, %arg1: memref<8x896xbf16, #tpu.memory_space<vmem>>, %arg2: memref<896x512xbf16, #tpu.memory_space<vmem>>, %arg3: memref<1x512xf32, #tpu.memory_space<vmem>>, %arg4: memref<8x512xbf16, #tpu.memory_space<vmem>>) attributes {dimension_semantics = [#tpu.dimension_semantics<parallel>], iteration_bounds = array<i64: 1>, scalar_prefetch = 0 : i64, scratch_operands = 0 : i64, tpu.core_type = #tpu.core_type<tc>, window_params = [{pipeline_mode = #tpu.pipeline_mode<synchronous>, transform_indices = @transform_0, window_bounds = array<i64: 8, 896>}, {transform_indices = @transform_1, window_bounds = array<i64: 896, 512>}, {transform_indices = @transform_2, window_bounds = array<i64: 1, 512>}, {transform_indices = @transform_3, window_bounds = array<i64: 8, 512>}]} {
    %c0 = arith.constant 0 : index
    %c0_0 = arith.constant 0 : index
    %0 = vector.load %arg1[%c0, %c0_0] : memref<8x896xbf16, #tpu.memory_space<vmem>>, vector<8x896xbf16>
    %c0_1 = arith.constant 0 : index
    %c0_2 = arith.constant 0 : index
    %1 = vector.load %arg2[%c0_1, %c0_2] : memref<896x512xbf16, #tpu.memory_space<vmem>>, vector<896x512xbf16>
    %cst = arith.constant dense<0.000000e+00> : vector<8x512xf32>
    %2 = tpu.matmul %0, %1, %cst {dimension_numbers = #tpu.dot_dimension_numbers<[1], [0], [0], [1], [0, 0, 1, 1], [], []>} : vector<8x896xbf16>, vector<896x512xbf16>, vector<8x512xf32> -> vector<8x512xf32>
    %c0_3 = arith.constant 0 : index
    %c0_4 = arith.constant 0 : index
    %3 = vector.load %arg3[%c0_3, %c0_4] : memref<1x512xf32, #tpu.memory_space<vmem>>, vector<1x512xf32>
    %4 = vector.broadcast %3 : vector<1x512xf32> to vector<8x512xf32>
    %5 = arith.addf %2, %4 : vector<8x512xf32>
    %cst_5 = arith.constant 0.000000e+00 : f32
    %6 = vector.broadcast %cst_5 : f32 to vector<8x512xf32>
    %7 = arith.cmpf oge, %5, %6 : vector<8x512xf32>
    %cst_6 = arith.constant 1.000000e-01 : f32
    %8 = vector.broadcast %cst_6 : f32 to vector<8x512xf32>
    %9 = arith.mulf %8, %5 : vector<8x512xf32>
    %10 = arith.select %7, %5, %9 : vector<8x512xi1>, vector<8x512xf32>
    %11 = arith.truncf %10 : vector<8x512xf32> to vector<8x512xbf16>
    %c0_7 = arith.constant 0 : index
    %c0_8 = arith.constant 0 : index
    %12 = vector.load %arg4[%c0_7, %c0_8] : memref<8x512xbf16, #tpu.memory_space<vmem>>, vector<8x512xbf16>
    tpu.vector_store %arg4[%c0_7, %c0_8], %11 {strides = array<i32>} : memref<8x512xbf16, #tpu.memory_space<vmem>>, vector<8x512xbf16>,
    return
  }
  func.func @transform_0(%arg0: i32) -> (i32, i32) {
    %c0_i32 = arith.constant 0 : i32
    %c0_i32_0 = arith.constant 0 : i32
    %c0_i32_1 = arith.constant 0 : i32
    return %c0_i32, %c0_i32_0 : i32, i32
  }
  func.func @transform_1(%arg0: i32) -> (i32, i32) {
    %c0_i32 = arith.constant 0 : i32
    %c0_i32_0 = arith.constant 0 : i32
    return %c0_i32, %arg0 : i32, i32
  }
  func.func @transform_2(%arg0: i32) -> (i32, i32) {
    %c0_i32 = arith.constant 0 : i32
    %c0_i32_0 = arith.constant 0 : i32
    return %c0_i32, %arg0 : i32, i32
  }
  func.func @transform_3(%arg0: i32) -> (i32, i32) {
    %c0_i32 = arith.constant 0 : i32
    %c0_i32_0 = arith.constant 0 : i32
    return %c0_i32, %arg0 : i32, i32
  }
}

</mosaic_0001>

<bundles_post_ra>
// kernel: tpu_custom_call.1
= control target key start
LH: loop header
LB: loop body
LE: loop exit
PB: predicated region body
PF: predicated region fallthrough
CT: control target
= control target key end

     0   :  { %8 = vsyncpa [#allocation3], 0  ;;  %s2579_s0 = inlined_call_operand.hbm [shape: bf16[8,896], index: 0, kind: input, shape index: {}]   ;;  %s2580_s1 = inlined_call_operand.hbm [shape: bf16[896,512], index: 1, kind: input, shape index: {}]   ;;  %s2581_s2 = inlined_call_operand.vmem [shape: f32[1,512], index: 2, kind: input, shape index: {}]   ;;  %s2582_s3 = inlined_call_operand.hbm [shape: bf16[8,512], index: 3, kind: output, shape index: {}]  }
   0x1   :  { %9 = vsyncpa [#allocation6], 0 }
   0x2   :  { %10 = vsyncpa [#allocation4], 0  ;;  %s2495_s12 = smov [#allocation2]   ;;  %s2496_s14 = smov [#allocation5]  }
   0x3   :  { %s17_s13 = sshll.u32 %s2495_s12, 4  ;;  %s26_s15 = sshll.u32 %s2496_s14, 4  ;;  %s18_s13 = int_to_ptr.vmem [resolvable:$true] %s17_s13  ;;  %s2521_s15 = int_to_ptr.vmem [resolvable:$true] %s26_s15 }
   0x4   :  { %s2423_s18 = scalar_lea.hbm %s2579_s0, 448 }
   0x5   :  { %p2424_p0 = scmp.ne.s32.totalorder %s2579_s0, %s2423_s18  ;;  %p2427_p1 = scmp.lt.u32.totalorder %s2423_s18, %s2579_s0 }
   0x7   :  { %p2429_p2 = pnand %p2427_p1, %p2424_p0 }
   0x9   :  { %2432 = shalt.err (!%p2429_p2)
}
   0xa   :  { %s2433_s23 = scalar_lea.vmem %s18_s13, 448  ;;  %p2438_p4 = scmp.lt.s32.totalorder %s18_s13, %s18_s13 }
   0xb   :  { %p2434_p3 = scmp.ne.s32.totalorder %s18_s13, %s2433_s23  ;;  %p2439_p5 = scmp.lt.s32.totalorder %s2433_s23, %s2433_s23 }
   0xd   :  { %p2440_p6 = por %p2439_p5, %p2438_p4 }
   0xf   :  { %p2441_p7 = pnand %p2440_p6, %p2434_p3 }
  0x11   :  { %2444 = shalt.err (!%p2441_p7)
}
  0x12   :  { %20 = dma.hbm_to_vmem [thread:$0]  %s2579_s0, 448, %s18_s13, [#allocation3]  }
  0x13   :  { %s2445_s28 = scalar_lea.hbm %s2580_s1, 28672 }
  0x14   :  { %p2446_p8 = scmp.ne.s32.totalorder %s2580_s1, %s2445_s28  ;;  %p2449_p9 = scmp.lt.u32.totalorder %s2445_s28, %s2580_s1 }
  0x16   :  { %p2451_p10 = pnand %p2449_p9, %p2446_p8 }
  0x18   :  { %2454 = shalt.err (!%p2451_p10)
}
  0x19   :  { %s2455_s6 = scalar_lea.vmem %s2521_s15, 28672  ;;  %p2460_p12 = scmp.lt.s32.totalorder %s2521_s15, %s2521_s15 }
  0x1a   :  { %p2456_p11 = scmp.ne.s32.totalorder %s2521_s15, %s2455_s6  ;;  %p2461_p13 = scmp.lt.s32.totalorder %s2455_s6, %s2455_s6 }
  0x1c   :  { %p2462_p0 = por %p2461_p13, %p2460_p12 }
  0x1e   :  { %p2463_p1 = pnand %p2462_p0, %p2456_p11 }
  0x20   :  { %2466 = shalt.err (!%p2463_p1)
}
  0x21   :  { %s2497_s0 = smov 256   ;;  %s2498_s7 = smov 16  }
  0x22   :  { %32 = dma.hbm_to_vmem [thread:$0]  %s2580_s1, 28672, %s2521_s15, [#allocation6], %s2497_s0, %s2497_s0, %s2498_s7  }
  0x23   :  { %2489 = dma.done.wait [#allocation3], 448  }
  0x24   :  { %2490 = vsyncadd [#allocation3], 4294966848 }
  0x25   :  { %2491 = dma.done.wait [#allocation6], 28672  }
  0x26   :  { %2492 = vsyncadd [#allocation6], 4294938624  ;;  %v2080_v0 = vld [vmem:[#allocation5 + $0x4] ss:$16 sps:$4 sm:$0xff]   ;;  %v2082_v1 = vld [vmem:[#allocation5 + $0xc] ss:$16 sps:$4 sm:$0xff]  }
  0x27   :  { %1437 = vmatprep.subr.bf16.mxu0 %v2080_v0  ;;  %v2084_v2 = vld [vmem:[#allocation5] ss:$16 sps:$4 sm:$0xff]   ;;  %v2085_v3 = vld [vmem:[#allocation5 + $0x8] ss:$16 sps:$4 sm:$0xff]   ;;  %1601 = vmatprep.subr.bf16.mxu1 %v2082_v1  ;;  %v2086_v4 = vld [vmem:[#allocation5 + $0x24] ss:$16 sps:$4 sm:$0xff]  }
  0x28   :  { %1438 = vmatpush1.bf16.msra.mxu0 %v2084_v2  ;;  %1602 = vmatpush1.bf16.msra.mxu1 %v2085_v3  ;;  %v2088_v5 = vld [vmem:[#allocation5 + $0x2c] ss:$16 sps:$4 sm:$0xff]   ;;  %v2090_v6 = vld [vmem:[#allocation5 + $0x20] ss:$16 sps:$4 sm:$0xff]   ;;  %v2091_v7 = vld [vmem:[#allocation5 + $0x28] ss:$16 sps:$4 sm:$0xff]  }
  0x29   :  { %1439 = vmatprep.subr.bf16.mxu0 %v2086_v4  ;;  %1603 = vmatprep.subr.bf16.mxu1 %v2088_v5  ;;  %v2092_v8 = vld [vmem:[#allocation5 + $0x44] ss:$16 sps:$4 sm:$0xff]   ;;  %v2094_v9 = vld [vmem:[#allocation5 + $0x4c] ss:$16 sps:$4 sm:$0xff]   ;;  %v2096_v10 = vld [vmem:[#allocation5 + $0x40] ss:$16 sps:$4 sm:$0xff]  }
  0x2a   :  { %v2097_v11 = vld [vmem:[#allocation5 + $0x48] ss:$16 sps:$4 sm:$0xff]   ;;  %v2098_v12 = vld [vmem:[#allocation5 + $0x64] ss:$16 sps:$4 sm:$0xff]   ;;  %v2100_v13 = vld [vmem:[#allocation5 + $0x6c] ss:$16 sps:$4 sm:$0xff]  }
  0x2b   :  { %v2102_v14 = vld [vmem:[#allocation5 + $0x60] ss:$16 sps:$4 sm:$0xff]   ;;  %v2103_v15 = vld [vmem:[#allocation5 + $0x68] ss:$16 sps:$4 sm:$0xff]   ;;  %v2104_v16 = vld [vmem:[#allocation5 + $0x84] ss:$16 sps:$4 sm:$0xff]  }
  0x2c   :  { %1440 = vmatpush1.bf16.msra.mxu0 %v2090_v6  ;;  %1604 = vmatpush1.bf16.msra.mxu1 %v2091_v7  ;;  %v2106_v17 = vld [vmem:[#allocation5 + $0x8c] ss:$16 sps:$4 sm:$0xff]   ;;  %v2108_v18 = vld [vmem:[#allocation5 + $0x80] ss:$16 sps:$4 sm:$0xff]   ;;  %v2109_v19 = vld [vmem:[#allocation5 + $0x88] ss:$16 sps:$4 sm:$0xff]  }
  0x2d   :  { %1441 = vmatprep.subr.bf16.mxu0 %v2092_v8  ;;  %1605 = vmatprep.subr.bf16.mxu1 %v2094_v9  ;;  %v2110_v20 = vld [vmem:[#allocation5 + $0xa4] ss:$16 sps:$4 sm:$0xff]   ;;  %v2112_v21 = vld [vmem:[#allocation5 + $0xac] ss:$16 sps:$4 sm:$0xff]   ;;  %v2114_v22 = vld [vmem:[#allocation5 + $0xa0] ss:$16 sps:$4 sm:$0xff]  }
  0x2e   :  { %v2115_v23 = vld [vmem:[#allocation5 + $0xa8] ss:$16 sps:$4 sm:$0xff]   ;;  %v2116_v24 = vld [vmem:[#allocation5 + $0xc4] ss:$16 sps:$4 sm:$0xff]   ;;  %v2118_v25 = vld [vmem:[#allocation5 + $0xcc] ss:$16 sps:$4 sm:$0xff]  }
  0x2f   :  { %v2120_v26 = vld [vmem:[#allocation5 + $0xc0] ss:$16 sps:$4 sm:$0xff]   ;;  %v2121_v27 = vld [vmem:[#allocation5 + $0xc8] ss:$16 sps:$4 sm:$0xff]   ;;  %v2122_v28 = vld [vmem:[#allocation5 + $0xe4] ss:$16 sps:$4 sm:$0xff]  }
  0x30   :  { %1442 = vmatpush1.bf16.msra.mxu0 %v2096_v10  ;;  %1606 = vmatpush1.bf16.msra.mxu1 %v2097_v11  ;;  %v2124_v29 = vld [vmem:[#allocation5 + $0xec] ss:$16 sps:$4 sm:$0xff]   ;;  %v2126_v30 = vld [vmem:[#allocation5 + $0xe0] ss:$16 sps:$4 sm:$0xff]   ;;  %v2127_v31 = vld [vmem:[#allocation5 + $0xe8] ss:$16 sps:$4 sm:$0xff]  }
  0x31   :  { %1443 = vmatprep.subr.bf16.mxu0 %v2098_v12  ;;  %1607 = vmatprep.subr.bf16.mxu1 %v2100_v13  ;;  %v2128_v32 = vld [vmem:[#allocation5 + $0x104] ss:$16 sps:$4 sm:$0xff]   ;;  %v2130_v33 = vld [vmem:[#allocation5 + $0x10c] ss:$16 sps:$4 sm:$0xff]   ;;  %v2132_v34 = vld [vmem:[#allocation5 + $0x100] ss:$16 sps:$4 sm:$0xff]  }
  0x32   :  { %v2133_v35 = vld [vmem:[#allocation5 + $0x108] ss:$16 sps:$4 sm:$0xff]   ;;  %v2134_v36 = vld [vmem:[#allocation5 + $0x124] ss:$16 sps:$4 sm:$0xff]   ;;  %v2136_v37 = vld [vmem:[#allocation5 + $0x12c] ss:$16 sps:$4 sm:$0xff]  }
  0x33   :  { %v2138_v38 = vld [vmem:[#allocation5 + $0x120] ss:$16 sps:$4 sm:$0xff]   ;;  %v2139_v39 = vld [vmem:[#allocation5 + $0x128] ss:$16 sps:$4 sm:$0xff]   ;;  %v2140_v40 = vld [vmem:[#allocation5 + $0x144] ss:$16 sps:$4 sm:$0xff]  }
  0x34   :  { %1444 = vmatpush1.bf16.msra.mxu0 %v2102_v14  ;;  %1608 = vmatpush1.bf16.msra.mxu1 %v2103_v15  ;;  %v2142_v41 = vld [vmem:[#allocation5 + $0x14c] ss:$16 sps:$4 sm:$0xff]   ;;  %v2144_v42 = vld [vmem:[#allocation5 + $0x140] ss:$16 sps:$4 sm:$0xff]   ;;  %v2145_v43 = vld [vmem:[#allocation5 + $0x148] ss:$16 sps:$4 sm:$0xff]  }
  0x35   :  { %1445 = vmatprep.subr.bf16.mxu0 %v2104_v16  ;;  %1609 = vmatprep.subr.bf16.mxu1 %v2106_v17  ;;  %v2146_v44 = vld [vmem:[#allocation5 + $0x164] ss:$16 sps:$4 sm:$0xff]   ;;  %v2148_v45 = vld [vmem:[#allocation5 + $0x16c] ss:$16 sps:$4 sm:$0xff]   ;;  %v2150_v47 = vld [vmem:[#allocation5 + $0x160] ss:$16 sps:$4 sm:$0xff]  }
  0x36   :  { %v42_v46 = vld [vmem:[#allocation2] sm:$0xff]  ;;  %v2154_v51 = vld [vmem:[#allocation5 + $0x18c] ss:$16 sps:$4 sm:$0xff]   ;;  %v2156_v52 = vld [vmem:[#allocation5 + $0x180] ss:$16 sps:$4 sm:$0xff]   ;;  %s2500_s11 = smov [#allocation7]  }
  0x37   :  { %v1812_v48 = vcombine.high %v42_v46, %v42_v46  ;;  %v2151_v49 = vld [vmem:[#allocation5 + $0x168] ss:$16 sps:$4 sm:$0xff]   ;;  %v2152_v50 = vld [vmem:[#allocation5 + $0x184] ss:$16 sps:$4 sm:$0xff]   ;;  %v2160_v55 = vld [vmem:[#allocation5 + $0x1ac] ss:$16 sps:$4 sm:$0xff]   ;;  %v1811_v4 = vcombine.low %v42_v46, %v42_v46 }
  0x38   :  { %1446 = vmatpush1.bf16.msra.mxu0 %v2108_v18  ;;  %1610 = vmatpush1.bf16.msra.mxu1 %v2109_v19  ;;  %v2157_v53 = vld [vmem:[#allocation5 + $0x188] ss:$16 sps:$4 sm:$0xff]   ;;  %v2158_v54 = vld [vmem:[#allocation5 + $0x1a4] ss:$16 sps:$4 sm:$0xff]   ;;  %v2162_v56 = vld [vmem:[#allocation5 + $0x1a0] ss:$16 sps:$4 sm:$0xff]  }
  0x39   :  { %1447 = vmatprep.subr.bf16.mxu0 %v2110_v20  ;;  %1611 = vmatprep.subr.bf16.mxu1 %v2112_v21  ;;  %v2163_v57 = vld [vmem:[#allocation5 + $0x1a8] ss:$16 sps:$4 sm:$0xff]   ;;  %v2164_v58 = vld [vmem:[#allocation5 + $0x1c4] ss:$16 sps:$4 sm:$0xff]   ;;  %v2166_v59 = vld [vmem:[#allocation5 + $0x1cc] ss:$16 sps:$4 sm:$0xff]  }
  0x3a   :  { %1469 = vmatprep.mubr.bf16.mxu0 %v1812_v48  ;;  %1633 = vmatprep.mubr.bf16.mxu1 %v1812_v48  ;;  %v2168_v60 = vld [vmem:[#allocation5 + $0x1c0] ss:$16 sps:$4 sm:$0xff]   ;;  %v2169_v61 = vld [vmem:[#allocation5 + $0x1c8] ss:$16 sps:$4 sm:$0xff]   ;;  %v2170_v62 = vld [vmem:[#allocation5 + $0x1e4] ss:$16 sps:$4 sm:$0xff]  }
  0x3b   :  { %v2172_v63 = vld [vmem:[#allocation5 + $0x1ec] ss:$16 sps:$4 sm:$0xff]   ;;  %v2174_v0 = vld [vmem:[#allocation5 + $0x1e0] ss:$16 sps:$4 sm:$0xff]   ;;  %v2175_v1 = vld [vmem:[#allocation5 + $0x1e8] ss:$16 sps:$4 sm:$0xff]  }
  0x3c   :  { %1448 = vmatpush1.bf16.msra.mxu0 %v2114_v22  ;;  %1612 = vmatpush1.bf16.msra.mxu1 %v2115_v23  ;;  %v2180_v2 = vld [vmem:[#allocation5 + $0x204] ss:$16 sps:$4 sm:$0xff]   ;;  %v2183_v3 = vld [vmem:[#allocation5 + $0x20c] ss:$16 sps:$4 sm:$0xff]   ;;  %v2178_v5 = vld [vmem:[#allocation5 + $0x200] ss:$16 sps:$4 sm:$0xff]  }
  0x3d   :  { %1449 = vmatprep.subr.bf16.mxu0 %v2116_v24  ;;  %1613 = vmatprep.subr.bf16.mxu1 %v2118_v25  ;;  %v2181_v6 = vld [vmem:[#allocation5 + $0x208] ss:$16 sps:$4 sm:$0xff]   ;;  %v2186_v7 = vld [vmem:[#allocation5 + $0x224] ss:$16 sps:$4 sm:$0xff]   ;;  %v2189_v8 = vld [vmem:[#allocation5 + $0x22c] ss:$16 sps:$4 sm:$0xff]  }
  0x3e   :  { %v2184_v9 = vld [vmem:[#allocation5 + $0x220] ss:$16 sps:$4 sm:$0xff]   ;;  %v2187_v10 = vld [vmem:[#allocation5 + $0x228] ss:$16 sps:$4 sm:$0xff]   ;;  %v2192_v11 = vld [vmem:[#allocation5 + $0x244] ss:$16 sps:$4 sm:$0xff]  }
  0x3f   :  { %v2195_v12 = vld [vmem:[#allocation5 + $0x24c] ss:$16 sps:$4 sm:$0xff]   ;;  %v2190_v13 = vld [vmem:[#allocation5 + $0x240] ss:$16 sps:$4 sm:$0xff]   ;;  %v2193_v14 = vld [vmem:[#allocation5 + $0x248] ss:$16 sps:$4 sm:$0xff]  }
  0x40   :  { %1450 = vmatpush1.bf16.msra.mxu0 %v2120_v26  ;;  %1614 = vmatpush1.bf16.msra.mxu1 %v2121_v27  ;;  %v2198_v15 = vld [vmem:[#allocation5 + $0x264] ss:$16 sps:$4 sm:$0xff]   ;;  %v2201_v16 = vld [vmem:[#allocation5 + $0x26c] ss:$16 sps:$4 sm:$0xff]   ;;  %v2196_v17 = vld [vmem:[#allocation5 + $0x260] ss:$16 sps:$4 sm:$0xff]  }
  0x41   :  { %1451 = vmatprep.subr.bf16.mxu0 %v2122_v28  ;;  %1615 = vmatprep.subr.bf16.mxu1 %v2124_v29  ;;  %v2199_v18 = vld [vmem:[#allocation5 + $0x268] ss:$16 sps:$4 sm:$0xff]   ;;  %v2204_v19 = vld [vmem:[#allocation5 + $0x284] ss:$16 sps:$4 sm:$0xff]   ;;  %v2207_v20 = vld [vmem:[#allocation5 + $0x28c] ss:$16 sps:$4 sm:$0xff]  }
  0x42   :  { %v2202_v21 = vld [vmem:[#allocation5 + $0x280] ss:$16 sps:$4 sm:$0xff]   ;;  %v2205_v22 = vld [vmem:[#allocation5 + $0x288] ss:$16 sps:$4 sm:$0xff]   ;;  %v2210_v23 = vld [vmem:[#allocation5 + $0x2a4] ss:$16 sps:$4 sm:$0xff]  }
  0x43   :  { %v2213_v24 = vld [vmem:[#allocation5 + $0x2ac] ss:$16 sps:$4 sm:$0xff]   ;;  %v2208_v25 = vld [vmem:[#allocation5 + $0x2a0] ss:$16 sps:$4 sm:$0xff]   ;;  %v2211_v26 = vld [vmem:[#allocation5 + $0x2a8] ss:$16 sps:$4 sm:$0xff]  }
  0x44   :  { %1452 = vmatpush1.bf16.msra.mxu0 %v2126_v30  ;;  %1616 = vmatpush1.bf16.msra.mxu1 %v2127_v31  ;;  %v2216_v27 = vld [vmem:[#allocation5 + $0x2c4] ss:$16 sps:$4 sm:$0xff]   ;;  %v2219_v28 = vld [vmem:[#allocation5 + $0x2cc] ss:$16 sps:$4 sm:$0xff]   ;;  %v2214_v31 = vld [vmem:[#allocation5 + $0x2c0] ss:$16 sps:$4 sm:$0xff]  }
  0x45   :  { %1453 = vmatprep.subr.bf16.mxu0 %v2128_v32  ;;  %1617 = vmatprep.subr.bf16.mxu1 %v2130_v33  ;;  %v2552_v29 = vld [vmem:[#allocation2 + $0x8] sm:$0xff]  ;;  %v2217_v32 = vld [vmem:[#allocation5 + $0x2c8] ss:$16 sps:$4 sm:$0xff]   ;;  %v2222_v33 = vld [vmem:[#allocation5 + $0x2e4] ss:$16 sps:$4 sm:$0xff]   ;;  %s1801_s12 = sshll.u32 %s2500_s11, 4  ;;  %s1802_s12 = int_to_ptr.vmem [resolvable:$true] %s1801_s12 }
  0x46   :  { %v1814_v30 = vcombine.high %v2552_v29, %v2552_v29  ;;  %v2243_v46 = vld [vmem:[#allocation5 + $0x34c] ss:$16 sps:$4 sm:$0xff]   ;;  %v2241_v48 = vld [vmem:[#allocation5 + $0x348] ss:$16 sps:$4 sm:$0xff]   ;;  %p2472_p3 = scmp.lt.s32.totalorder %s1802_s12, %s1802_s12 }
  0x48   :  { %1454 = vmatpush1.bf16.msra.mxu0 %v2132_v34  ;;  %1618 = vmatpush1.bf16.msra.mxu1 %v2133_v35  ;;  %v2225_v34 = vld [vmem:[#allocation5 + $0x2ec] ss:$16 sps:$4 sm:$0xff]   ;;  %v2220_v35 = vld [vmem:[#allocation5 + $0x2e0] ss:$16 sps:$4 sm:$0xff]  }
  0x49   :  { %1455 = vmatprep.subr.bf16.mxu0 %v2134_v36  ;;  %1619 = vmatprep.subr.bf16.mxu1 %v2136_v37  ;;  %v2223_v36 = vld [vmem:[#allocation5 + $0x2e8] ss:$16 sps:$4 sm:$0xff]   ;;  %v2228_v37 = vld [vmem:[#allocation5 + $0x304] ss:$16 sps:$4 sm:$0xff]  }
  0x4c   :  { %1456 = vmatpush1.bf16.msra.mxu0 %v2138_v38  ;;  %1620 = vmatpush1.bf16.msra.mxu1 %v2139_v39  ;;  %v2231_v38 = vld [vmem:[#allocation5 + $0x30c] ss:$16 sps:$4 sm:$0xff]   ;;  %v2226_v39 = vld [vmem:[#allocation5 + $0x300] ss:$16 sps:$4 sm:$0xff]  }
  0x4d   :  { %1457 = vmatprep.subr.bf16.mxu0 %v2140_v40  ;;  %1621 = vmatprep.subr.bf16.mxu1 %v2142_v41  ;;  %v2229_v40 = vld [vmem:[#allocation5 + $0x308] ss:$16 sps:$4 sm:$0xff]   ;;  %v2234_v41 = vld [vmem:[#allocation5 + $0x324] ss:$16 sps:$4 sm:$0xff]  }
  0x50   :  { %1458 = vmatpush1.bf16.msra.mxu0 %v2144_v42  ;;  %1622 = vmatpush1.bf16.msra.mxu1 %v2145_v43  ;;  %v2237_v42 = vld [vmem:[#allocation5 + $0x32c] ss:$16 sps:$4 sm:$0xff]   ;;  %v2232_v43 = vld [vmem:[#allocation5 + $0x320] ss:$16 sps:$4 sm:$0xff]  }
  0x51   :  { %1459 = vmatprep.subr.bf16.mxu0 %v2146_v44  ;;  %1623 = vmatprep.subr.bf16.mxu1 %v2148_v45  ;;  %v2235_v44 = vld [vmem:[#allocation5 + $0x328] ss:$16 sps:$4 sm:$0xff]   ;;  %v2240_v45 = vld [vmem:[#allocation5 + $0x344] ss:$16 sps:$4 sm:$0xff]  }
  0x54   :  { %1460 = vmatpush1.bf16.msra.mxu0 %v2150_v47  ;;  %1624 = vmatpush1.bf16.msra.mxu1 %v2151_v49  ;;  %v2238_v47 = vld [vmem:[#allocation5 + $0x340] ss:$16 sps:$4 sm:$0xff]   ;;  %v2246_v49 = vld [vmem:[#allocation5 + $0x364] ss:$16 sps:$4 sm:$0xff]  }
  0x55   :  { %1461 = vmatprep.subr.bf16.mxu0 %v2152_v50  ;;  %1625 = vmatprep.subr.bf16.mxu1 %v2154_v51  ;;  %v2249_v50 = vld [vmem:[#allocation5 + $0x36c] ss:$16 sps:$4 sm:$0xff]   ;;  %v2244_v51 = vld [vmem:[#allocation5 + $0x360] ss:$16 sps:$4 sm:$0xff]  }
  0x58   :  { %1462 = vmatpush1.bf16.msra.mxu0 %v2156_v52  ;;  %1626 = vmatpush1.bf16.msra.mxu1 %v2157_v53  ;;  %v2247_v52 = vld [vmem:[#allocation5 + $0x368] ss:$16 sps:$4 sm:$0xff]   ;;  %v2252_v53 = vld [vmem:[#allocation5 + $0x384] ss:$16 sps:$4 sm:$0xff]  }
  0x59   :  { %1463 = vmatprep.subr.bf16.mxu0 %v2158_v54  ;;  %1627 = vmatprep.subr.bf16.mxu1 %v2160_v55  ;;  %v2255_v54 = vld [vmem:[#allocation5 + $0x38c] ss:$16 sps:$4 sm:$0xff]   ;;  %v2250_v55 = vld [vmem:[#allocation5 + $0x380] ss:$16 sps:$4 sm:$0xff]  }
  0x5c   :  { %1464 = vmatpush1.bf16.msra.mxu0 %v2162_v56  ;;  %1628 = vmatpush1.bf16.msra.mxu1 %v2163_v57  ;;  %v2253_v56 = vld [vmem:[#allocation5 + $0x388] ss:$16 sps:$4 sm:$0xff]   ;;  %v2258_v57 = vld [vmem:[#allocation5 + $0x3a4] ss:$16 sps:$4 sm:$0xff]  }
  0x5d   :  { %1465 = vmatprep.subr.bf16.mxu0 %v2164_v58  ;;  %1629 = vmatprep.subr.bf16.mxu1 %v2166_v59  ;;  %v2261_v58 = vld [vmem:[#allocation5 + $0x3ac] ss:$16 sps:$4 sm:$0xff]   ;;  %v2256_v59 = vld [vmem:[#allocation5 + $0x3a0] ss:$16 sps:$4 sm:$0xff]  }
  0x60   :  { %1466 = vmatpush1.bf16.msra.mxu0 %v2168_v60  ;;  %1630 = vmatpush1.bf16.msra.mxu1 %v2169_v61  ;;  %v2259_v60 = vld [vmem:[#allocation5 + $0x3a8] ss:$16 sps:$4 sm:$0xff]   ;;  %v2264_v61 = vld [vmem:[#allocation5 + $0x3c4] ss:$16 sps:$4 sm:$0xff]  }
  0x61   :  { %1467 = vmatprep.subr.bf16.mxu0 %v2170_v62  ;;  %1631 = vmatprep.subr.bf16.mxu1 %v2172_v63  ;;  %v2267_v62 = vld [vmem:[#allocation5 + $0x3cc] ss:$16 sps:$4 sm:$0xff]   ;;  %v2262_v63 = vld [vmem:[#allocation5 + $0x3c0] ss:$16 sps:$4 sm:$0xff]  }
  0x64   :  { %1468 = vmatpush1.bf16.msra.mxu0 %v2174_v0  ;;  %1632 = vmatpush1.bf16.msra.mxu1 %v2175_v1  ;;  %v2265_v0 = vld [vmem:[#allocation5 + $0x3c8] ss:$16 sps:$4 sm:$0xff]   ;;  %v2270_v1 = vld [vmem:[#allocation5 + $0x3e4] ss:$16 sps:$4 sm:$0xff]  }
  0x65   :  { %1478 = vmatprep.subr.bf16.mxu0 %v2180_v2  ;;  %1642 = vmatprep.subr.bf16.mxu1 %v2183_v3  ;;  %v2273_v2 = vld [vmem:[#allocation5 + $0x3ec] ss:$16 sps:$4 sm:$0xff]   ;;  %v2268_v3 = vld [vmem:[#allocation5 + $0x3e0] ss:$16 sps:$4 sm:$0xff]  }
  0x67   :  { %1470 = vmatmul.mubr.bf16.vlgmr.msra.gmra.mrb[0].mxu0 %v1811_v4  ;;  %1634 = vmatmul.mubr.bf16.vlgmr.msra.gmra.mrb[0].mxu1 %v1811_v4  ;;  %v2271_v4 = vld [vmem:[#allocation5 + $0x3e8] ss:$16 sps:$4 sm:$0xff]  }
  0x68   :  { %1479 = vmatpush1.bf16.msra.mxu0 %v2178_v5  ;;  %1643 = vmatpush1.bf16.msra.mxu1 %v2181_v6  ;;  %v2278_v5 = vld [vmem:[#allocation5 + $0x404] ss:$16 sps:$4 sm:$0xff]   ;;  %v2281_v6 = vld [vmem:[#allocation5 + $0x40c] ss:$16 sps:$4 sm:$0xff]  }
  0x69   :  { %1480 = vmatprep.subr.bf16.mxu0 %v2186_v7  ;;  %1644 = vmatprep.subr.bf16.mxu1 %v2189_v8  ;;  %v1813_v7 = vcombine.low %v2552_v29, %v2552_v29  ;;  %v2276_v8 = vld [vmem:[#allocation5 + $0x400] ss:$16 sps:$4 sm:$0xff]   ;;  %v2311_v29 = vld [vmem:[#allocation5 + $0x4ac] ss:$16 sps:$4 sm:$0xff]  }
  0x6a   :  { %1510 = vmatprep.mubr.bf16.mxu0 %v1814_v30  ;;  %1674 = vmatprep.mubr.bf16.mxu1 %v1814_v30  ;;  %v2306_v30 = vld [vmem:[#allocation5 + $0x4a0] ss:$16 sps:$4 sm:$0xff]  }
  0x6c   :  { %1481 = vmatpush1.bf16.msra.mxu0 %v2184_v9  ;;  %1645 = vmatpush1.bf16.msra.mxu1 %v2187_v10  ;;  %v2279_v9 = vld [vmem:[#allocation5 + $0x408] ss:$16 sps:$4 sm:$0xff]   ;;  %v2284_v10 = vld [vmem:[#allocation5 + $0x424] ss:$16 sps:$4 sm:$0xff]  }
  0x6d   :  { %1482 = vmatprep.subr.bf16.mxu0 %v2192_v11  ;;  %1646 = vmatprep.subr.bf16.mxu1 %v2195_v12  ;;  %v2558_v11 = vld [vmem:[#allocation2 + $0x10] sm:$0xff]  ;;  %v2287_v12 = vld [vmem:[#allocation5 + $0x42c] ss:$16 sps:$4 sm:$0xff]  }
  0x70   :  { %1483 = vmatpush1.bf16.msra.mxu0 %v2190_v13  ;;  %1647 = vmatpush1.bf16.msra.mxu1 %v2193_v14  ;;  %v1816_v13 = vcombine.high %v2558_v11, %v2558_v11  ;;  %v2282_v14 = vld [vmem:[#allocation5 + $0x420] ss:$16 sps:$4 sm:$0xff]  }
  0x71   :  { %1484 = vmatprep.subr.bf16.mxu0 %v2198_v15  ;;  %1648 = vmatprep.subr.bf16.mxu1 %v2201_v16  ;;  %v2285_v15 = vld [vmem:[#allocation5 + $0x428] ss:$16 sps:$4 sm:$0xff]   ;;  %v2290_v16 = vld [vmem:[#allocation5 + $0x444] ss:$16 sps:$4 sm:$0xff]  }
  0x74   :  { %1485 = vmatpush1.bf16.msra.mxu0 %v2196_v17  ;;  %1649 = vmatpush1.bf16.msra.mxu1 %v2199_v18  ;;  %v2293_v17 = vld [vmem:[#allocation5 + $0x44c] ss:$16 sps:$4 sm:$0xff]   ;;  %v2288_v18 = vld [vmem:[#allocation5 + $0x440] ss:$16 sps:$4 sm:$0xff]  }
  0x75   :  { %1486 = vmatprep.subr.bf16.mxu0 %v2204_v19  ;;  %1650 = vmatprep.subr.bf16.mxu1 %v2207_v20  ;;  %v2291_v19 = vld [vmem:[#allocation5 + $0x448] ss:$16 sps:$4 sm:$0xff]   ;;  %v2296_v20 = vld [vmem:[#allocation5 + $0x464] ss:$16 sps:$4 sm:$0xff]  }
  0x78   :  { %1487 = vmatpush1.bf16.msra.mxu0 %v2202_v21  ;;  %1651 = vmatpush1.bf16.msra.mxu1 %v2205_v22  ;;  %v2299_v21 = vld [vmem:[#allocation5 + $0x46c] ss:$16 sps:$4 sm:$0xff]   ;;  %v2294_v22 = vld [vmem:[#allocation5 + $0x460] ss:$16 sps:$4 sm:$0xff]  }
  0x79   :  { %1488 = vmatprep.subr.bf16.mxu0 %v2210_v23  ;;  %1652 = vmatprep.subr.bf16.mxu1 %v2213_v24  ;;  %v2297_v23 = vld [vmem:[#allocation5 + $0x468] ss:$16 sps:$4 sm:$0xff]   ;;  %v2302_v24 = vld [vmem:[#allocation5 + $0x484] ss:$16 sps:$4 sm:$0xff]  }
  0x7c   :  { %1489 = vmatpush1.bf16.msra.mxu0 %v2208_v25  ;;  %1653 = vmatpush1.bf16.msra.mxu1 %v2211_v26  ;;  %v2305_v25 = vld [vmem:[#allocation5 + $0x48c] ss:$16 sps:$4 sm:$0xff]   ;;  %v2300_v26 = vld [vmem:[#allocation5 + $0x480] ss:$16 sps:$4 sm:$0xff]  }
  0x7d   :  { %1490 = vmatprep.subr.bf16.mxu0 %v2216_v27  ;;  %1654 = vmatprep.subr.bf16.mxu1 %v2219_v28  ;;  %v2303_v27 = vld [vmem:[#allocation5 + $0x488] ss:$16 sps:$4 sm:$0xff]   ;;  %v2308_v28 = vld [vmem:[#allocation5 + $0x4a4] ss:$16 sps:$4 sm:$0xff]  }
  0x80   :  { %1491 = vmatpush1.bf16.msra.mxu0 %v2214_v31  ;;  %1655 = vmatpush1.bf16.msra.mxu1 %v2217_v32  ;;  %v2309_v31 = vld [vmem:[#allocation5 + $0x4a8] ss:$16 sps:$4 sm:$0xff]   ;;  %v2314_v32 = vld [vmem:[#allocation5 + $0x4c4] ss:$16 sps:$4 sm:$0xff]  }
  0x81   :  { %1492 = vmatprep.subr.bf16.mxu0 %v2222_v33  ;;  %1656 = vmatprep.subr.bf16.mxu1 %v2225_v34  ;;  %v2317_v33 = vld [vmem:[#allocation5 + $0x4cc] ss:$16 sps:$4 sm:$0xff]   ;;  %v2312_v34 = vld [vmem:[#allocation5 + $0x4c0] ss:$16 sps:$4 sm:$0xff]  }
  0x84   :  { %1493 = vmatpush1.bf16.msra.mxu0 %v2220_v35  ;;  %1657 = vmatpush1.bf16.msra.mxu1 %v2223_v36  ;;  %v2315_v35 = vld [vmem:[#allocation5 + $0x4c8] ss:$16 sps:$4 sm:$0xff]   ;;  %v2320_v36 = vld [vmem:[#allocation5 + $0x4e4] ss:$16 sps:$4 sm:$0xff]  }
  0x85   :  { %1494 = vmatprep.subr.bf16.mxu0 %v2228_v37  ;;  %1658 = vmatprep.subr.bf16.mxu1 %v2231_v38  ;;  %v2323_v37 = vld [vmem:[#allocation5 + $0x4ec] ss:$16 sps:$4 sm:$0xff]   ;;  %v2318_v38 = vld [vmem:[#allocation5 + $0x4e0] ss:$16 sps:$4 sm:$0xff]  }
  0x88   :  { %1495 = vmatpush1.bf16.msra.mxu0 %v2226_v39  ;;  %1659 = vmatpush1.bf16.msra.mxu1 %v2229_v40  ;;  %v2321_v39 = vld [vmem:[#allocation5 + $0x4e8] ss:$16 sps:$4 sm:$0xff]   ;;  %v2326_v40 = vld [vmem:[#allocation5 + $0x504] ss:$16 sps:$4 sm:$0xff]  }
  0x89   :  { %1496 = vmatprep.subr.bf16.mxu0 %v2234_v41  ;;  %1660 = vmatprep.subr.bf16.mxu1 %v2237_v42  ;;  %v2329_v41 = vld [vmem:[#allocation5 + $0x50c] ss:$16 sps:$4 sm:$0xff]   ;;  %v2324_v42 = vld [vmem:[#allocation5 + $0x500] ss:$16 sps:$4 sm:$0xff]  }
  0x8c   :  { %1497 = vmatpush1.bf16.msra.mxu0 %v2232_v43  ;;  %1661 = vmatpush1.bf16.msra.mxu1 %v2235_v44  ;;  %v2327_v43 = vld [vmem:[#allocation5 + $0x508] ss:$16 sps:$4 sm:$0xff]   ;;  %v2332_v44 = vld [vmem:[#allocation5 + $0x524] ss:$16 sps:$4 sm:$0xff]  }
  0x8d   :  { %1498 = vmatprep.subr.bf16.mxu0 %v2240_v45  ;;  %1662 = vmatprep.subr.bf16.mxu1 %v2243_v46  ;;  %v2335_v45 = vld [vmem:[#allocation5 + $0x52c] ss:$16 sps:$4 sm:$0xff]   ;;  %v2330_v46 = vld [vmem:[#allocation5 + $0x520] ss:$16 sps:$4 sm:$0xff]  }
  0x90   :  { %1499 = vmatpush1.bf16.msra.mxu0 %v2238_v47  ;;  %1663 = vmatpush1.bf16.msra.mxu1 %v2241_v48  ;;  %v2333_v47 = vld [vmem:[#allocation5 + $0x528] ss:$16 sps:$4 sm:$0xff]   ;;  %v2338_v48 = vld [vmem:[#allocation5 + $0x544] ss:$16 sps:$4 sm:$0xff]  }
  0x91   :  { %1500 = vmatprep.subr.bf16.mxu0 %v2246_v49  ;;  %1664 = vmatprep.subr.bf16.mxu1 %v2249_v50  ;;  %v2341_v49 = vld [vmem:[#allocation5 + $0x54c] ss:$16 sps:$4 sm:$0xff]   ;;  %v2336_v50 = vld [vmem:[#allocation5 + $0x540] ss:$16 sps:$4 sm:$0xff]  }
  0x94   :  { %1501 = vmatpush1.bf16.msra.mxu0 %v2244_v51  ;;  %1665 = vmatpush1.bf16.msra.mxu1 %v2247_v52  ;;  %v2339_v51 = vld [vmem:[#allocation5 + $0x548] ss:$16 sps:$4 sm:$0xff]   ;;  %v2344_v52 = vld [vmem:[#allocation5 + $0x564] ss:$16 sps:$4 sm:$0xff]  }
  0x95   :  { %1502 = vmatprep.subr.bf16.mxu0 %v2252_v53  ;;  %1666 = vmatprep.subr.bf16.mxu1 %v2255_v54  ;;  %v2347_v53 = vld [vmem:[#allocation5 + $0x56c] ss:$16 sps:$4 sm:$0xff]   ;;  %v2342_v54 = vld [vmem:[#allocation5 + $0x560] ss:$16 sps:$4 sm:$0xff]  }
  0x98   :  { %1503 = vmatpush1.bf16.msra.mxu0 %v2250_v55  ;;  %1667 = vmatpush1.bf16.msra.mxu1 %v2253_v56  ;;  %v2345_v55 = vld [vmem:[#allocation5 + $0x568] ss:$16 sps:$4 sm:$0xff]   ;;  %v2350_v56 = vld [vmem:[#allocation5 + $0x584] ss:$16 sps:$4 sm:$0xff]  }
  0x99   :  { %1504 = vmatprep.subr.bf16.mxu0 %v2258_v57  ;;  %1668 = vmatprep.subr.bf16.mxu1 %v2261_v58  ;;  %v2353_v57 = vld [vmem:[#allocation5 + $0x58c] ss:$16 sps:$4 sm:$0xff]   ;;  %v2348_v58 = vld [vmem:[#allocation5 + $0x580] ss:$16 sps:$4 sm:$0xff]  }
  0x9c   :  { %1505 = vmatpush1.bf16.msra.mxu0 %v2256_v59  ;;  %1669 = vmatpush1.bf16.msra.mxu1 %v2259_v60  ;;  %v2351_v59 = vld [vmem:[#allocation5 + $0x588] ss:$16 sps:$4 sm:$0xff]   ;;  %v2356_v60 = vld [vmem:[#allocation5 + $0x5a4] ss:$16 sps:$4 sm:$0xff]  }
  0x9d   :  { %1506 = vmatprep.subr.bf16.mxu0 %v2264_v61  ;;  %1670 = vmatprep.subr.bf16.mxu1 %v2267_v62  ;;  %v2359_v61 = vld [vmem:[#allocation5 + $0x5ac] ss:$16 sps:$4 sm:$0xff]   ;;  %v2354_v62 = vld [vmem:[#allocation5 + $0x5a0] ss:$16 sps:$4 sm:$0xff]  }
  0xa0   :  { %1507 = vmatpush1.bf16.msra.mxu0 %v2262_v63  ;;  %1671 = vmatpush1.bf16.msra.mxu1 %v2265_v0  ;;  %v2357_v63 = vld [vmem:[#allocation5 + $0x5a8] ss:$16 sps:$4 sm:$0xff]   ;;  %v2362_v0 = vld [vmem:[#allocation5 + $0x5c4] ss:$16 sps:$4 sm:$0xff]  }
  0xa1   :  { %1508 = vmatprep.subr.bf16.mxu0 %v2270_v1  ;;  %1672 = vmatprep.subr.bf16.mxu1 %v2273_v2  ;;  %v2365_v1 = vld [vmem:[#allocation5 + $0x5cc] ss:$16 sps:$4 sm:$0xff]   ;;  %v2360_v2 = vld [vmem:[#allocation5 + $0x5c0] ss:$16 sps:$4 sm:$0xff]  }
  0xa4   :  { %1509 = vmatpush1.bf16.msra.mxu0 %v2268_v3  ;;  %1673 = vmatpush1.bf16.msra.mxu1 %v2271_v4  ;;  %v2363_v3 = vld [vmem:[#allocation5 + $0x5c8] ss:$16 sps:$4 sm:$0xff]   ;;  %v2368_v4 = vld [vmem:[#allocation5 + $0x5e4] ss:$16 sps:$4 sm:$0xff]  }
  0xa5   :  { %1519 = vmatprep.subr.bf16.mxu0 %v2278_v5  ;;  %1683 = vmatprep.subr.bf16.mxu1 %v2281_v6  ;;  %v2371_v5 = vld [vmem:[#allocation5 + $0x5ec] ss:$16 sps:$4 sm:$0xff]   ;;  %v2366_v6 = vld [vmem:[#allocation5 + $0x5e0] ss:$16 sps:$4 sm:$0xff]  }
  0xa7   :  { %1511 = vmatmul.mubr.bf16.vlgmr.msra.gmra.mrb[0].mxu0 %v1813_v7  ;;  %1675 = vmatmul.mubr.bf16.vlgmr.msra.gmra.mrb[0].mxu1 %v1813_v7  ;;  %v2369_v7 = vld [vmem:[#allocation5 + $0x5e8] ss:$16 sps:$4 sm:$0xff]  }
  0xa8   :  { %1520 = vmatpush1.bf16.msra.mxu0 %v2276_v8  ;;  %1684 = vmatpush1.bf16.msra.mxu1 %v2279_v9  ;;  %v2376_v8 = vld [vmem:[#allocation5 + $0x604] ss:$16 sps:$4 sm:$0xff]   ;;  %v2379_v9 = vld [vmem:[#allocation5 + $0x60c] ss:$16 sps:$4 sm:$0xff]  }
  0xa9   :  { %1521 = vmatprep.subr.bf16.mxu0 %v2284_v10  ;;  %1685 = vmatprep.subr.bf16.mxu1 %v2287_v12  ;;  %v1815_v10 = vcombine.low %v2558_v11, %v2558_v11  ;;  %v2374_v12 = vld [vmem:[#allocation5 + $0x600] ss:$16 sps:$4 sm:$0xff]  }
  0xaa   :  { %1551 = vmatprep.mubr.bf16.mxu0 %v1816_v13  ;;  %1715 = vmatprep.mubr.bf16.mxu1 %v1816_v13  ;;  %v2377_v13 = vld [vmem:[#allocation5 + $0x608] ss:$16 sps:$4 sm:$0xff]   ;;  %v2386_v11 = vld [vmem:[#allocation5 + $0x640] ss:$16 sps:$4 sm:$0xff]  }
  0xac   :  { %1522 = vmatpush1.bf16.msra.mxu0 %v2282_v14  ;;  %1686 = vmatpush1.bf16.msra.mxu1 %v2285_v15  ;;  %v2382_v14 = vld [vmem:[#allocation5 + $0x624] ss:$16 sps:$4 sm:$0xff]   ;;  %v2385_v15 = vld [vmem:[#allocation5 + $0x62c] ss:$16 sps:$4 sm:$0xff]  }
  0xad   :  { %1523 = vmatprep.subr.bf16.mxu0 %v2290_v16  ;;  %1687 = vmatprep.subr.bf16.mxu1 %v2293_v17  ;;  %v2380_v16 = vld [vmem:[#allocation5 + $0x620] ss:$16 sps:$4 sm:$0xff]   ;;  %v2383_v17 = vld [vmem:[#allocation5 + $0x628] ss:$16 sps:$4 sm:$0xff]  }
  0xb0   :  { %1524 = vmatpush1.bf16.msra.mxu0 %v2288_v18  ;;  %1688 = vmatpush1.bf16.msra.mxu1 %v2291_v19  ;;  %v2388_v18 = vld [vmem:[#allocation5 + $0x644] ss:$16 sps:$4 sm:$0xff]   ;;  %v2391_v19 = vld [vmem:[#allocation5 + $0x64c] ss:$16 sps:$4 sm:$0xff]  }
  0xb1   :  { %1525 = vmatprep.subr.bf16.mxu0 %v2296_v20  ;;  %1689 = vmatprep.subr.bf16.mxu1 %v2299_v21  ;;  %v2499_v20 = vmov 0   ;;  %v2389_v21 = vld [vmem:[#allocation5 + $0x648] ss:$16 sps:$4 sm:$0xff]  }
  0xb4   :  { %1526 = vmatpush1.bf16.msra.mxu0 %v2294_v22  ;;  %1690 = vmatpush1.bf16.msra.mxu1 %v2297_v23  ;;  %v2394_v22 = vld [vmem:[#allocation5 + $0x664] ss:$16 sps:$4 sm:$0xff]   ;;  %v2397_v23 = vld [vmem:[#allocation5 + $0x66c] ss:$16 sps:$4 sm:$0xff]  }
  0xb5   :  { %1527 = vmatprep.subr.bf16.mxu0 %v2302_v24  ;;  %1691 = vmatprep.subr.bf16.mxu1 %v2305_v25  ;;  %v2392_v24 = vld [vmem:[#allocation5 + $0x660] ss:$16 sps:$4 sm:$0xff]   ;;  %v2395_v25 = vld [vmem:[#allocation5 + $0x668] ss:$16 sps:$4 sm:$0xff]  }
  0xb8   :  { %1528 = vmatpush1.bf16.msra.mxu0 %v2300_v26  ;;  %1692 = vmatpush1.bf16.msra.mxu1 %v2303_v27  ;;  %v2400_v26 = vld [vmem:[#allocation5 + $0x684] ss:$16 sps:$4 sm:$0xff]   ;;  %v2403_v27 = vld [vmem:[#allocation5 + $0x68c] ss:$16 sps:$4 sm:$0xff]  }
  0xb9   :  { %1529 = vmatprep.subr.bf16.mxu0 %v2308_v28  ;;  %1693 = vmatprep.subr.bf16.mxu1 %v2311_v29  ;;  %v2398_v28 = vld [vmem:[#allocation5 + $0x680] ss:$16 sps:$4 sm:$0xff]   ;;  %v2401_v29 = vld [vmem:[#allocation5 + $0x688] ss:$16 sps:$4 sm:$0xff]  }
  0xbc   :  { %1530 = vmatpush1.bf16.msra.mxu0 %v2306_v30  ;;  %1694 = vmatpush1.bf16.msra.mxu1 %v2309_v31  ;;  %v2406_v30 = vld [vmem:[#allocation5 + $0x6a4] ss:$16 sps:$4 sm:$0xff]   ;;  %v2409_v31 = vld [vmem:[#allocation5 + $0x6ac] ss:$16 sps:$4 sm:$0xff]  }
  0xbd   :  { %1531 = vmatprep.subr.bf16.mxu0 %v2314_v32  ;;  %1695 = vmatprep.subr.bf16.mxu1 %v2317_v33  ;;  %v2404_v32 = vld [vmem:[#allocation5 + $0x6a0] ss:$16 sps:$4 sm:$0xff]   ;;  %v2407_v33 = vld [vmem:[#allocation5 + $0x6a8] ss:$16 sps:$4 sm:$0xff]  }
  0xc0   :  { %1532 = vmatpush1.bf16.msra.mxu0 %v2312_v34  ;;  %1696 = vmatpush1.bf16.msra.mxu1 %v2315_v35  ;;  %v2412_v34 = vld [vmem:[#allocation5 + $0x6c4] ss:$16 sps:$4 sm:$0xff]   ;;  %v2415_v35 = vld [vmem:[#allocation5 + $0x6cc] ss:$16 sps:$4 sm:$0xff]  }
  0xc1   :  { %1533 = vmatprep.subr.bf16.mxu0 %v2320_v36  ;;  %1697 = vmatprep.subr.bf16.mxu1 %v2323_v37  ;;  %v2410_v36 = vld [vmem:[#allocation5 + $0x6c0] ss:$16 sps:$4 sm:$0xff]   ;;  %v2413_v37 = vld [vmem:[#allocation5 + $0x6c8] ss:$16 sps:$4 sm:$0xff]  }
  0xc4   :  { %1534 = vmatpush1.bf16.msra.mxu0 %v2318_v38  ;;  %1698 = vmatpush1.bf16.msra.mxu1 %v2321_v39  ;;  %v2418_v38 = vld [vmem:[#allocation5 + $0x6e4] ss:$16 sps:$4 sm:$0xff]   ;;  %v2421_v39 = vld [vmem:[#allocation5 + $0x6ec] ss:$16 sps:$4 sm:$0xff]  }
  0xc5   :  { %1535 = vmatprep.subr.bf16.mxu0 %v2326_v40  ;;  %1699 = vmatprep.subr.bf16.mxu1 %v2329_v41  ;;  %v2416_v40 = vld [vmem:[#allocation5 + $0x6e0] ss:$16 sps:$4 sm:$0xff]   ;;  %v2419_v41 = vld [vmem:[#allocation5 + $0x6e8] ss:$16 sps:$4 sm:$0xff]  }
  0xc8   :  { %1536 = vmatpush1.bf16.msra.mxu0 %v2324_v42  ;;  %1700 = vmatpush1.bf16.msra.mxu1 %v2327_v43  ;;  %v2422_v42 = vld [vmem:[#allocation2 + $0x18] ss:$0 sps:$4 sm:$0xff]   ;;  %v272_v43 = vlaneseq }
  0xc9   :  { %1537 = vmatprep.subr.bf16.mxu0 %v2332_v44  ;;  %1701 = vmatprep.subr.bf16.mxu1 %v2335_v45 }
  0xca   :  { %v273_v44 = vshrl.u32 %v272_v43, 7 }
  0xcc   :  { %1538 = vmatpush1.bf16.msra.mxu0 %v2330_v46  ;;  %1702 = vmatpush1.bf16.msra.mxu1 %v2333_v47  ;;  %v274_v45 = vsub.s32 0, %v273_v44  ;;  %v282_v46 = vsub.s32 2, %v273_v44  ;;  %v270_v47 = vld [vmem:[%s2581_s2] sm:$0xf]  ;;  %s2467_s2 = scalar_lea.vmem %s1802_s12, 256 }
  0xcd   :  { %1539 = vmatprep.subr.bf16.mxu0 %v2338_v48  ;;  %1703 = vmatprep.subr.bf16.mxu1 %v2341_v49  ;;  %v278_v48 = vsub.s32 1, %v273_v44  ;;  %v286_v49 = vsub.s32 3, %v273_v44  ;;  %p2468_p2 = scmp.ne.s32.totalorder %s1802_s12, %s2467_s2  ;;  %p2473_p4 = scmp.lt.s32.totalorder %s2467_s2, %s2467_s2 }
  0xcf   :  { %p2474_p5 = por %p2473_p4, %p2472_p3 }
  0xd0   :  { %1540 = vmatpush1.bf16.msra.mxu0 %v2336_v50  ;;  %1704 = vmatpush1.bf16.msra.mxu1 %v2339_v51  ;;  %v275_v50 = vrot.slane %v270_v47, %v274_v45  ;;  %v283_v51 = vrot.slane %v270_v47, %v282_v46 }
  0xd1   :  { %1541 = vmatprep.subr.bf16.mxu0 %v2344_v52  ;;  %1705 = vmatprep.subr.bf16.mxu1 %v2347_v53  ;;  %v279_v52 = vrot.slane %v270_v47, %v278_v48  ;;  %v287_v53 = vrot.slane %v270_v47, %v286_v49  ;;  %p2475_p6 = pnand %p2474_p5, %p2468_p2 }
  0xd4   :  { %1542 = vmatpush1.bf16.msra.mxu0 %v2342_v54  ;;  %1706 = vmatpush1.bf16.msra.mxu1 %v2345_v55 }
  0xd5   :  { %1543 = vmatprep.subr.bf16.mxu0 %v2350_v56  ;;  %1707 = vmatprep.subr.bf16.mxu1 %v2353_v57 }
  0xd8   :  { %1544 = vmatpush1.bf16.msra.mxu0 %v2348_v58  ;;  %1708 = vmatpush1.bf16.msra.mxu1 %v2351_v59 }
  0xd9   :  { %1545 = vmatprep.subr.bf16.mxu0 %v2356_v60  ;;  %1709 = vmatprep.subr.bf16.mxu1 %v2359_v61 }
  0xdc   :  { %1546 = vmatpush1.bf16.msra.mxu0 %v2354_v62  ;;  %1710 = vmatpush1.bf16.msra.mxu1 %v2357_v63 }
  0xdd   :  { %1547 = vmatprep.subr.bf16.mxu0 %v2362_v0  ;;  %1711 = vmatprep.subr.bf16.mxu1 %v2365_v1 }
  0xe0   :  { %1548 = vmatpush1.bf16.msra.mxu0 %v2360_v2  ;;  %1712 = vmatpush1.bf16.msra.mxu1 %v2363_v3 }
  0xe1   :  { %1549 = vmatprep.subr.bf16.mxu0 %v2368_v4  ;;  %1713 = vmatprep.subr.bf16.mxu1 %v2371_v5 }
  0xe4   :  { %1550 = vmatpush1.bf16.msra.mxu0 %v2366_v6  ;;  %1714 = vmatpush1.bf16.msra.mxu1 %v2369_v7 }
  0xe5   :  { %1560 = vmatprep.subr.bf16.mxu0 %v2376_v8  ;;  %1724 = vmatprep.subr.bf16.mxu1 %v2379_v9 }
  0xe7   :  { %1552 = vmatmul.mubr.bf16.vlgmr.msra.gmra.mrb[0].mxu0 %v1815_v10  ;;  %1716 = vmatmul.mubr.bf16.vlgmr.msra.gmra.mrb[0].mxu1 %v1815_v10 }
  0xe8   :  { %1561 = vmatpush1.bf16.msra.mxu0 %v2374_v12  ;;  %1725 = vmatpush1.bf16.msra.mxu1 %v2377_v13 }
  0xe9   :  { %1562 = vmatprep.subr.bf16.mxu0 %v2382_v14  ;;  %1726 = vmatprep.subr.bf16.mxu1 %v2385_v15 }
  0xea   :  { %1592 = vmatprep.mubr.bf16.mxu0 %v2499_v20  ;;  %1756 = vmatprep.mubr.bf16.mxu1 %v2499_v20 }
  0xec   :  { %1563 = vmatpush1.bf16.msra.mxu0 %v2380_v16  ;;  %1727 = vmatpush1.bf16.msra.mxu1 %v2383_v17 }
  0xed   :  { %1564 = vmatprep.subr.bf16.mxu0 %v2388_v18  ;;  %1728 = vmatprep.subr.bf16.mxu1 %v2391_v19 }
  0xf0   :  { %1565 = vmatpush1.bf16.msra.mxu0 %v2386_v11  ;;  %1729 = vmatpush1.bf16.msra.mxu1 %v2389_v21 }
  0xf1   :  { %1566 = vmatprep.subr.bf16.mxu0 %v2394_v22  ;;  %1730 = vmatprep.subr.bf16.mxu1 %v2397_v23 }
  0xf4   :  { %1567 = vmatpush1.bf16.msra.mxu0 %v2392_v24  ;;  %1731 = vmatpush1.bf16.msra.mxu1 %v2395_v25 }
  0xf5   :  { %1568 = vmatprep.subr.bf16.mxu0 %v2400_v26  ;;  %1732 = vmatprep.subr.bf16.mxu1 %v2403_v27 }
  0xf8   :  { %1569 = vmatpush1.bf16.msra.mxu0 %v2398_v28  ;;  %1733 = vmatpush1.bf16.msra.mxu1 %v2401_v29 }
  0xf9   :  { %1570 = vmatprep.subr.bf16.mxu0 %v2406_v30  ;;  %1734 = vmatprep.subr.bf16.mxu1 %v2409_v31 }
  0xfc   :  { %1571 = vmatpush1.bf16.msra.mxu0 %v2404_v32  ;;  %1735 = vmatpush1.bf16.msra.mxu1 %v2407_v33 }
  0xfd   :  { %1572 = vmatprep.subr.bf16.mxu0 %v2412_v34  ;;  %1736 = vmatprep.subr.bf16.mxu1 %v2415_v35 }
 0x100   :  { %1573 = vmatpush1.bf16.msra.mxu0 %v2410_v36  ;;  %1737 = vmatpush1.bf16.msra.mxu1 %v2413_v37 }
 0x101   :  { %1574 = vmatprep.subr.bf16.mxu0 %v2418_v38  ;;  %1738 = vmatprep.subr.bf16.mxu1 %v2421_v39 }
 0x104   :  { %1575 = vmatpush1.bf16.msra.mxu0 %v2416_v40  ;;  %1739 = vmatpush1.bf16.msra.mxu1 %v2419_v41 }
 0x107   :  { %1593 = vmatmul.mubr.bf16.vlgmr.msra.gmra.mrb[0].mxu0 %v2422_v42  ;;  %1757 = vmatmul.mubr.bf16.vlgmr.msra.gmra.mrb[0].mxu1 %v2422_v42 }
 0x1da   :  { %v1594_v54 = vpop.f32.mrb[0].mxu0  ;;  %v1758_v55 = vpop.f32.mrb[0].mxu1 }
 0x1db   :  { %v2046_v56 = vadd.f32 %v1594_v54, %v275_v50  ;;  %v2048_v57 = vadd.f32 %v1758_v55, %v283_v51  ;;  %v1596_v58 = vpop.f32.mrb[1].mxu0  ;;  %v1760_v59 = vpop.f32.mrb[1].mxu1 }
 0x1dc   :  { %v2047_v60 = vadd.f32 %v1596_v58, %v279_v52  ;;  %v2049_v61 = vadd.f32 %v1760_v59, %v287_v53  ;;  %v1598_v62 = vpop.f32.mrb[2].mxu0  ;;  %v1762_v63 = vpop.f32.mrb[2].mxu1 }
 0x1dd   :  { %vm1765_vm0 = vcmp.ge.f32.partialorder %v2046_v56, 0.0  ;;  %v1769_v0 = vmul.f32 0.1, %v2046_v56  ;;  %vm1767_vm1 = vcmp.ge.f32.partialorder %v2048_v57, 0.0  ;;  %v1771_v1 = vmul.f32 0.1, %v2048_v57 }
 0x1de   :  { %vm1766_vm2 = vcmp.ge.f32.partialorder %v2047_v60, 0.0  ;;  %v1770_v2 = vmul.f32 0.1, %v2047_v60  ;;  %vm1768_vm3 = vcmp.ge.f32.partialorder %v2049_v61, 0.0  ;;  %v1772_v3 = vmul.f32 0.1, %v2049_v61 }
 0x1df   :  { %v1773_v4 = vsel %vm1765_vm0, %v2046_v56, %v1769_v0  ;;  %v1775_v5 = vsel %vm1767_vm1, %v2048_v57, %v1771_v1  ;;  %v1599_v6 = vpop.f32.mrb[3].mxu0  ;;  %v1763_v7 = vpop.f32.mrb[3].mxu1 }
 0x1e0   :  { %v1774_v8 = vsel %vm1766_vm2, %v2047_v60, %v1770_v2  ;;  %v1776_v9 = vsel %vm1768_vm3, %v2049_v61, %v1772_v3 }
 0x1e1   :  { %v2044_v10 = vpack.c.bf16 %v1774_v8, %v1773_v4  ;;  %v2045_v12 = vpack.c.bf16 %v1776_v9, %v1775_v5 }
 0x1e3   :  { %1793 = vst [vmem:[#allocation7] sm:$0xff] %v2044_v10  ;;  %1794 = vst [vmem:[#allocation7 + $0x8] sm:$0xff] %v2045_v12 }
 0x1e4   :  { %2478 = shalt.err (!%p2475_p6)
}
 0x1e5   :  { %s2479_s15 = scalar_lea.hbm %s2582_s3, 256 }
 0x1e6   :  { %p2480_p7 = scmp.ne.s32.totalorder %s2582_s3, %s2479_s15  ;;  %p2483_p8 = scmp.lt.u32.totalorder %s2479_s15, %s2582_s3 }
 0x1e8   :  { %p2485_p9 = pnand %p2483_p8, %p2480_p7 }
 0x1ea   :  { %2488 = shalt.err (!%p2485_p9)
}
 0x1eb   :  { %1804 = dma.vmem_to_hbm [thread:$0]  %s1802_s12, 256, %s2582_s3, [#allocation4]  }
 0x1ec   :  { %2493 = dma.done.wait [#allocation4], 256  }
 0x1ed   :  { %2494 = vsyncadd [#allocation4], 4294967040 }
 0x1ee   :  { %1808 = vsyncpa [#allocation3], 1 }
 0x1ef   :  { %1809 = vsyncpa [#allocation6], 1 }
 0x1f0   :  { %1810 = vsyncpa [#allocation4], 1 }

</bundles_post_ra>
